<compile_context>
chip_gen: v6e
topology: v6e:2x2x1
jax: 0.10.0
libtpu: 0.0.40
codegen_flags: <defaults>
</compile_context>

<pallas_src>
import functools

import jax
import jax.numpy as jnp
from jax.experimental import pallas as pl
from jax.experimental.pallas import tpu as pltpu

NLAYERS = 4
EPS = 1e-5
LANE = 128


def _round_up(n, m):
    return ((n + m - 1) // m) * m


# --------------------------------------------------------------------------
# Kernel
# --------------------------------------------------------------------------
def mlp_bn_kernel(x_ref, w0_ref, wh_ref, wo_ref, gb_ref, bo_ref, out_ref):
    """Fused MLP forward (single invocation, everything VMEM-resident).

    x_ref  : (B, Din_p)            f32  flattened input, zero-padded lanes
    w0_ref : (Din_p, Dh)           bf16 first Linear weight, (in, out) layout
    wh_ref : (NLAYERS-1, Dh, Dh)   bf16 hidden Linear weights
    wo_ref : (Dh, Dout_p)          bf16 output Linear weight
    gb_ref : (2*NLAYERS, Dh)       f32  rows: gamma0, beta0, ..., gamma3, beta3
    bo_ref : (1, Dout_p)           f32  output Linear bias
    out_ref: (B, Dout_p)           f32  padded output (caller slices real cols)
    """
    inv_b = 1.0 / x_ref.shape[0]
    gb = gb_ref[...]

    def bn_relu(h, i):
        # Training-mode BN statistics, one pass in f32 (biased variance).
        mean = jnp.sum(h, axis=0, keepdims=True) * inv_b
        ex2 = jnp.sum(h * h, axis=0, keepdims=True) * inv_b
        var = jnp.maximum(ex2 - mean * mean, 0.0)
        # Fold gamma/beta/mean/var into per-feature scale + shift, fuse ReLU.
        scale = gb[2 * i][None, :] * jax.lax.rsqrt(var + EPS)
        shift = gb[2 * i + 1][None, :] - mean * scale
        return jnp.maximum(h * scale + shift, 0.0)

    # Layer 0.  Per-layer Linear bias omitted: a constant per-feature bias
    # before training-mode BatchNorm is cancelled by the mean subtraction.
    h = jnp.dot(
        x_ref[...].astype(jnp.bfloat16), w0_ref[...],
        preferred_element_type=jnp.float32,
    )
    h = bn_relu(h, 0)

    for i in range(1, NLAYERS):
        h = jnp.dot(
            h.astype(jnp.bfloat16), wh_ref[i - 1],
            preferred_element_type=jnp.float32,
        )
        h = bn_relu(h, i)

    out_ref[...] = (
        jnp.dot(h.astype(jnp.bfloat16), wo_ref[...],
                preferred_element_type=jnp.float32)
        + bo_ref[...]
    )


# --------------------------------------------------------------------------
# One-time parameter packing (hoisted out of the forward pass)
# --------------------------------------------------------------------------
def pack_params(params, input_size, hidden_size, output_size,
                weight_dtype=jnp.bfloat16):
    """Zero-pad each dim to a lane multiple and stack; run ONCE at init."""
    din_p = _round_up(input_size, LANE)
    dh = _round_up(hidden_size, LANE)
    dout_p = _round_up(output_size, LANE)

    w0 = jnp.zeros((din_p, dh), weight_dtype)
    wh = jnp.zeros((NLAYERS - 1, dh, dh), weight_dtype)
    gb = jnp.zeros((2 * NLAYERS, dh), jnp.float32)

    for i in range(NLAYERS):
        w, _b, g, beta = params[4 * i: 4 * i + 4]   # per-layer bias dropped
        if i == 0:
            w0 = w0.at[: w.shape[0], : w.shape[1]].set(w.astype(weight_dtype))
        else:
            wh = wh.at[i - 1, : w.shape[0], : w.shape[1]].set(
                w.astype(weight_dtype))
        gb = gb.at[2 * i, : g.shape[-1]].set(g.reshape(-1))
        gb = gb.at[2 * i + 1, : beta.shape[-1]].set(beta.reshape(-1))

    w_out, b_out = params[-2], params[-1]
    wo = jnp.zeros((dh, dout_p), weight_dtype)
    wo = wo.at[: w_out.shape[0], : w_out.shape[1]].set(w_out.astype(weight_dtype))
    bo = jnp.zeros((1, dout_p), jnp.float32)
    bo = bo.at[0, : b_out.shape[-1]].set(b_out.reshape(-1))

    return {"w0": w0, "wh": wh, "wo": wo, "gb": gb, "bo": bo}


# --------------------------------------------------------------------------
# Forward wrapper (jitted; `packed` is passed in pre-built)
# --------------------------------------------------------------------------
def mlp_forward(x, packed, *, input_size, hidden_size, output_size):
    del hidden_size  # implied by packed shapes
    batch = x.shape[0]
    x2d = x.reshape(batch, -1).astype(jnp.float32)          # x.view(batch, -1)
    assert x2d.shape[1] == input_size

    din_p = packed["w0"].shape[0]
    dout_p = packed["wo"].shape[1]

    x_pad = jnp.zeros((batch, din_p), jnp.float32).at[:, :input_size].set(x2d)

    # Actual resident footprint (+ double-buffer factor + headroom), so larger
    # hidden sizes are not rejected by the default 16/32 MiB scoped VMEM limit.
    resident_bytes = (
        x_pad.size * 4
        + packed["w0"].size * 2 + packed["wh"].size * 2 + packed["wo"].size * 2
        + packed["gb"].size * 4 + packed["bo"].size * 4
        + batch * dout_p * 4
    )
    vmem_limit = int(min(max(2 * resident_bytes + (2 << 20), 16 << 20), 64 << 20))

    vmem = pl.BlockSpec(memory_space=pltpu.MemorySpace.VMEM)
    out_pad = pl.pallas_call(
        mlp_bn_kernel,
        out_shape=jax.ShapeDtypeStruct((batch, dout_p), jnp.float32),
        in_specs=[vmem] * 6,
        out_specs=vmem,
        compiler_params=pltpu.CompilerParams(vmem_limit_bytes=vmem_limit),
    )(x_pad, packed["w0"], packed["wh"], packed["wo"], packed["gb"], packed["bo"])
    return out_pad[:, :output_size]


# --------------------------------------------------------------------------
# Parameter init + references
# --------------------------------------------------------------------------
def init_params(key, input_size, output_size, hidden_size):
    """Deterministic synthetic parameters. Linear weights stored as (in, out)."""
    params = []
    in_dim = input_size
    for _ in range(NLAYERS):
        key, kw, kb = jax.random.split(key, 3)
        w = jax.random.normal(kw, (in_dim, hidden_size), jnp.float32) * 0.1
        b = jax.random.normal(kb, (1, hidden_size), jnp.float32) * 0.1
        gamma = jnp.ones((1, hidden_size), jnp.float32)
        beta = jnp.zeros((1, hidden_size), jnp.float32)
        params += [w, b, gamma, beta]
        in_dim = hidden_size
    key, kw, kb = jax.random.split(key, 3)
    w_out = jax.random.normal(kw, (in_dim, output_size), jnp.float32) * 0.1
    b_out = jax.random.normal(kb, (1, output_size), jnp.float32) * 0.1
    params += [w_out, b_out]
    return params


def reference_forward(x, params, bf16_matmul=False):
    """Pure-JAX reference of the original module (training-mode BN).

    With bf16_matmul=True the matmul inputs are quantized exactly like the
    kernel (bf16 operands, f32 accumulation) so the comparison isolates kernel
    correctness from the intentional bf16-weight precision trade-off.
    """
    def mm(a, w):
        if bf16_matmul:
            return jnp.dot(a.astype(jnp.bfloat16), w.astype(jnp.bfloat16),
                           preferred_element_type=jnp.float32)
        return jnp.dot(a, w, preferred_element_type=jnp.float32)

    h = x.reshape(x.shape[0], -1).astype(jnp.float32)
    for i in range(NLAYERS):
        w, b, g, beta = params[4 * i: 4 * i + 4]
        h = mm(h, w) + b
        mean = jnp.mean(h, axis=0, keepdims=True)
        var = jnp.mean((h - mean) ** 2, axis=0, keepdims=True)
        h = (h - mean) * jax.lax.rsqrt(var + EPS) * g + beta
        h = jnp.maximum(h, 0.0)
    return mm(h, params[-2]) + params[-1]


# --------------------------------------------------------------------------
if __name__ == "__main__":
    batch = 16          # multiple of 16: fills bf16 sublane packing nicely
    input_size = 16     # flattened feature size of x
    hidden_size = 32
    output_size = 8

    key = jax.random.PRNGKey(0)
    key, kx = jax.random.split(key)
    # x shaped (batch, 4, 4) to exercise the view(batch, -1) flatten
    x = jax.random.normal(kx, (batch, 4, 4), jnp.float32)

    params = init_params(key, input_size, output_size, hidden_size)

    # Pack ONCE (not per forward call).
    packed = pack_params(params, input_size, hidden_size, output_size)

    forward = jax.jit(functools.partial(
        mlp_forward,
        input_size=input_size, hidden_size=hidden_size, output_size=output_size))

    out = jax.block_until_ready(forward(x, packed))
    assert out.shape == (batch, output_size)

    # Tight check vs a precision-matched reference (same bf16 matmul operands).
    ref_bf16 = reference_forward(x, params, bf16_matmul=True)
    assert jnp.allclose(out, ref_bf16, atol=1e-3, rtol=1e-3), \
        "mismatch vs bf16-matched JAX reference"

    # Loose sanity check vs the exact f32 module semantics (bf16-weight
    # quantization is the only source of difference).
    ref_f32 = reference_forward(x, params, bf16_matmul=False)
    assert jnp.allclose(out, ref_f32, atol=1e-1, rtol=1e-1), \
        "drift vs f32 module reference too large"

    print("KERNEL_OK")
</pallas_src>

<mosaic_0001>
module attributes {stable_mosaic.version = 11 : i64} {
  func.func @mlp_bn_kernel(%arg0: memref<16x128xf32, #tpu.memory_space<vmem>>, %arg1: memref<128x128xbf16, #tpu.memory_space<vmem>>, %arg2: memref<3x128x128xbf16, #tpu.memory_space<vmem>>, %arg3: memref<128x128xbf16, #tpu.memory_space<vmem>>, %arg4: memref<8x128xf32, #tpu.memory_space<vmem>>, %arg5: memref<1x128xf32, #tpu.memory_space<vmem>>, %arg6: memref<16x128xf32, #tpu.memory_space<vmem>>) attributes {dimension_semantics = [], scalar_prefetch = 0 : i64, scratch_operands = 0 : i64, tpu.core_type = #tpu.core_type<tc>} {
    %c0 = arith.constant 0 : index
    %c0_0 = arith.constant 0 : index
    %0 = vector.load %arg4[%c0, %c0_0] : memref<8x128xf32, #tpu.memory_space<vmem>>, vector<8x128xf32>
    %c0_1 = arith.constant 0 : index
    %c0_2 = arith.constant 0 : index
    %1 = vector.load %arg0[%c0_1, %c0_2] : memref<16x128xf32, #tpu.memory_space<vmem>>, vector<16x128xf32>
    %2 = arith.truncf %1 : vector<16x128xf32> to vector<16x128xbf16>
    %c0_3 = arith.constant 0 : index
    %c0_4 = arith.constant 0 : index
    %3 = vector.load %arg1[%c0_3, %c0_4] : memref<128x128xbf16, #tpu.memory_space<vmem>>, vector<128x128xbf16>
    %cst = arith.constant dense<0.000000e+00> : vector<16x128xf32>
    %4 = tpu.matmul %2, %3, %cst {dimension_numbers = #tpu.dot_dimension_numbers<[1], [0], [0], [1], [0, 0, 1, 1], [], []>} : vector<16x128xbf16>, vector<128x128xbf16>, vector<16x128xf32> -> vector<16x128xf32>
    %cst_5 = arith.constant dense<0.000000e+00> : vector<128xf32>
    %5 = vector.multi_reduction <add>, %4, %cst_5 [0] : vector<16x128xf32> to vector<128xf32>
    %6 = vector.shape_cast %5 : vector<128xf32> to vector<1x128xf32>
    %cst_6 = arith.constant 6.250000e-02 : f32
    %7 = vector.broadcast %cst_6 : f32 to vector<1x128xf32>
    %8 = arith.mulf %6, %7 : vector<1x128xf32>
    %9 = arith.mulf %4, %4 : vector<16x128xf32>
    %cst_7 = arith.constant dense<0.000000e+00> : vector<128xf32>
    %10 = vector.multi_reduction <add>, %9, %cst_7 [0] : vector<16x128xf32> to vector<128xf32>
    %11 = vector.shape_cast %10 : vector<128xf32> to vector<1x128xf32>
    %cst_8 = arith.constant 6.250000e-02 : f32
    %12 = vector.broadcast %cst_8 : f32 to vector<1x128xf32>
    %13 = arith.mulf %11, %12 : vector<1x128xf32>
    %14 = arith.mulf %8, %8 : vector<1x128xf32>
    %15 = arith.subf %13, %14 : vector<1x128xf32>
    %cst_9 = arith.constant 0.000000e+00 : f32
    %16 = vector.broadcast %cst_9 : f32 to vector<1x128xf32>
    %17 = arith.maximumf %15, %16 : vector<1x128xf32>
    %18 = vector.extract_strided_slice %0 {offsets = [0, 0], sizes = [1, 128], strides = [1, 1]} : vector<8x128xf32> to vector<1x128xf32>
    %19 = vector.shape_cast %18 : vector<1x128xf32> to vector<128xf32>
    %20 = vector.shape_cast %19 : vector<128xf32> to vector<1x128xf32>
    %cst_10 = arith.constant 9.99999974E-6 : f32
    %21 = vector.broadcast %cst_10 : f32 to vector<1x128xf32>
    %22 = arith.addf %17, %21 : vector<1x128xf32>
    %23 = math.rsqrt %22 : vector<1x128xf32>
    %24 = arith.mulf %20, %23 : vector<1x128xf32>
    %25 = vector.extract_strided_slice %0 {offsets = [1, 0], sizes = [1, 128], strides = [1, 1]} : vector<8x128xf32> to vector<1x128xf32>
    %26 = vector.shape_cast %25 : vector<1x128xf32> to vector<128xf32>
    %27 = vector.shape_cast %26 : vector<128xf32> to vector<1x128xf32>
    %28 = arith.mulf %8, %24 : vector<1x128xf32>
    %29 = arith.subf %27, %28 : vector<1x128xf32>
    %30 = vector.broadcast %24 : vector<1x128xf32> to vector<16x128xf32>
    %31 = arith.mulf %4, %30 : vector<16x128xf32>
    %32 = vector.broadcast %29 : vector<1x128xf32> to vector<16x128xf32>
    %33 = arith.addf %31, %32 : vector<16x128xf32>
    %cst_11 = arith.constant 0.000000e+00 : f32
    %34 = vector.broadcast %cst_11 : f32 to vector<16x128xf32>
    %35 = arith.maximumf %33, %34 : vector<16x128xf32>
    %36 = arith.truncf %35 : vector<16x128xf32> to vector<16x128xbf16>
    %c0_12 = arith.constant 0 : index
    %c0_13 = arith.constant 0 : index
    %c0_14 = arith.constant 0 : index
    %37 = vector.load %arg2[%c0_12, %c0_13, %c0_14] : memref<3x128x128xbf16, #tpu.memory_space<vmem>>, vector<1x128x128xbf16>
    %38 = vector.shape_cast %37 : vector<1x128x128xbf16> to vector<128x128xbf16>
    %cst_15 = arith.constant dense<0.000000e+00> : vector<16x128xf32>
    %39 = tpu.matmul %36, %38, %cst_15 {dimension_numbers = #tpu.dot_dimension_numbers<[1], [0], [0], [1], [0, 0, 1, 1], [], []>} : vector<16x128xbf16>, vector<128x128xbf16>, vector<16x128xf32> -> vector<16x128xf32>
    %cst_16 = arith.constant dense<0.000000e+00> : vector<128xf32>
    %40 = vector.multi_reduction <add>, %39, %cst_16 [0] : vector<16x128xf32> to vector<128xf32>
    %41 = vector.shape_cast %40 : vector<128xf32> to vector<1x128xf32>
    %cst_17 = arith.constant 6.250000e-02 : f32
    %42 = vector.broadcast %cst_17 : f32 to vector<1x128xf32>
    %43 = arith.mulf %41, %42 : vector<1x128xf32>
    %44 = arith.mulf %39, %39 : vector<16x128xf32>
    %cst_18 = arith.constant dense<0.000000e+00> : vector<128xf32>
    %45 = vector.multi_reduction <add>, %44, %cst_18 [0] : vector<16x128xf32> to vector<128xf32>
    %46 = vector.shape_cast %45 : vector<128xf32> to vector<1x128xf32>
    %cst_19 = arith.constant 6.250000e-02 : f32
    %47 = vector.broadcast %cst_19 : f32 to vector<1x128xf32>
    %48 = arith.mulf %46, %47 : vector<1x128xf32>
    %49 = arith.mulf %43, %43 : vector<1x128xf32>
    %50 = arith.subf %48, %49 : vector<1x128xf32>
    %cst_20 = arith.constant 0.000000e+00 : f32
    %51 = vector.broadcast %cst_20 : f32 to vector<1x128xf32>
    %52 = arith.maximumf %50, %51 : vector<1x128xf32>
    %53 = vector.extract_strided_slice %0 {offsets = [2, 0], sizes = [1, 128], strides = [1, 1]} : vector<8x128xf32> to vector<1x128xf32>
    %54 = vector.shape_cast %53 : vector<1x128xf32> to vector<128xf32>
    %55 = vector.shape_cast %54 : vector<128xf32> to vector<1x128xf32>
    %cst_21 = arith.constant 9.99999974E-6 : f32
    %56 = vector.broadcast %cst_21 : f32 to vector<1x128xf32>
    %57 = arith.addf %52, %56 : vector<1x128xf32>
    %58 = math.rsqrt %57 : vector<1x128xf32>
    %59 = arith.mulf %55, %58 : vector<1x128xf32>
    %60 = vector.extract_strided_slice %0 {offsets = [3, 0], sizes = [1, 128], strides = [1, 1]} : vector<8x128xf32> to vector<1x128xf32>
    %61 = vector.shape_cast %60 : vector<1x128xf32> to vector<128xf32>
    %62 = vector.shape_cast %61 : vector<128xf32> to vector<1x128xf32>
    %63 = arith.mulf %43, %59 : vector<1x128xf32>
    %64 = arith.subf %62, %63 : vector<1x128xf32>
    %65 = vector.broadcast %59 : vector<1x128xf32> to vector<16x128xf32>
    %66 = arith.mulf %39, %65 : vector<16x128xf32>
    %67 = vector.broadcast %64 : vector<1x128xf32> to vector<16x128xf32>
    %68 = arith.addf %66, %67 : vector<16x128xf32>
    %cst_22 = arith.constant 0.000000e+00 : f32
    %69 = vector.broadcast %cst_22 : f32 to vector<16x128xf32>
    %70 = arith.maximumf %68, %69 : vector<16x128xf32>
    %71 = arith.truncf %70 : vector<16x128xf32> to vector<16x128xbf16>
    %c1 = arith.constant 1 : index
    %c0_23 = arith.constant 0 : index
    %c0_24 = arith.constant 0 : index
    %72 = vector.load %arg2[%c1, %c0_23, %c0_24] : memref<3x128x128xbf16, #tpu.memory_space<vmem>>, vector<1x128x128xbf16>
    %73 = vector.shape_cast %72 : vector<1x128x128xbf16> to vector<128x128xbf16>
    %cst_25 = arith.constant dense<0.000000e+00> : vector<16x128xf32>
    %74 = tpu.matmul %71, %73, %cst_25 {dimension_numbers = #tpu.dot_dimension_numbers<[1], [0], [0], [1], [0, 0, 1, 1], [], []>} : vector<16x128xbf16>, vector<128x128xbf16>, vector<16x128xf32> -> vector<16x128xf32>
    %cst_26 = arith.constant dense<0.000000e+00> : vector<128xf32>
    %75 = vector.multi_reduction <add>, %74, %cst_26 [0] : vector<16x128xf32> to vector<128xf32>
    %76 = vector.shape_cast %75 : vector<128xf32> to vector<1x128xf32>
    %cst_27 = arith.constant 6.250000e-02 : f32
    %77 = vector.broadcast %cst_27 : f32 to vector<1x128xf32>
    %78 = arith.mulf %76, %77 : vector<1x128xf32>
    %79 = arith.mulf %74, %74 : vector<16x128xf32>
    %cst_28 = arith.constant dense<0.000000e+00> : vector<128xf32>
    %80 = vector.multi_reduction <add>, %79, %cst_28 [0] : vector<16x128xf32> to vector<128xf32>
    %81 = vector.shape_cast %80 : vector<128xf32> to vector<1x128xf32>
    %cst_29 = arith.constant 6.250000e-02 : f32
    %82 = vector.broadcast %cst_29 : f32 to vector<1x128xf32>
    %83 = arith.mulf %81, %82 : vector<1x128xf32>
    %84 = arith.mulf %78, %78 : vector<1x128xf32>
    %85 = arith.subf %83, %84 : vector<1x128xf32>
    %cst_30 = arith.constant 0.000000e+00 : f32
    %86 = vector.broadcast %cst_30 : f32 to vector<1x128xf32>
    %87 = arith.maximumf %85, %86 : vector<1x128xf32>
    %88 = vector.extract_strided_slice %0 {offsets = [4, 0], sizes = [1, 128], strides = [1, 1]} : vector<8x128xf32> to vector<1x128xf32>
    %89 = vector.shape_cast %88 : vector<1x128xf32> to vector<128xf32>
    %90 = vector.shape_cast %89 : vector<128xf32> to vector<1x128xf32>
    %cst_31 = arith.constant 9.99999974E-6 : f32
    %91 = vector.broadcast %cst_31 : f32 to vector<1x128xf32>
    %92 = arith.addf %87, %91 : vector<1x128xf32>
    %93 = math.rsqrt %92 : vector<1x128xf32>
    %94 = arith.mulf %90, %93 : vector<1x128xf32>
    %95 = vector.extract_strided_slice %0 {offsets = [5, 0], sizes = [1, 128], strides = [1, 1]} : vector<8x128xf32> to vector<1x128xf32>
    %96 = vector.shape_cast %95 : vector<1x128xf32> to vector<128xf32>
    %97 = vector.shape_cast %96 : vector<128xf32> to vector<1x128xf32>
    %98 = arith.mulf %78, %94 : vector<1x128xf32>
    %99 = arith.subf %97, %98 : vector<1x128xf32>
    %100 = vector.broadcast %94 : vector<1x128xf32> to vector<16x128xf32>
    %101 = arith.mulf %74, %100 : vector<16x128xf32>
    %102 = vector.broadcast %99 : vector<1x128xf32> to vector<16x128xf32>
    %103 = arith.addf %101, %102 : vector<16x128xf32>
    %cst_32 = arith.constant 0.000000e+00 : f32
    %104 = vector.broadcast %cst_32 : f32 to vector<16x128xf32>
    %105 = arith.maximumf %103, %104 : vector<16x128xf32>
    %106 = arith.truncf %105 : vector<16x128xf32> to vector<16x128xbf16>
    %c2 = arith.constant 2 : index
    %c0_33 = arith.constant 0 : index
    %c0_34 = arith.constant 0 : index
    %107 = vector.load %arg2[%c2, %c0_33, %c0_34] : memref<3x128x128xbf16, #tpu.memory_space<vmem>>, vector<1x128x128xbf16>
    %108 = vector.shape_cast %107 : vector<1x128x128xbf16> to vector<128x128xbf16>
    %cst_35 = arith.constant dense<0.000000e+00> : vector<16x128xf32>
    %109 = tpu.matmul %106, %108, %cst_35 {dimension_numbers = #tpu.dot_dimension_numbers<[1], [0], [0], [1], [0, 0, 1, 1], [], []>} : vector<16x128xbf16>, vector<128x128xbf16>, vector<16x128xf32> -> vector<16x128xf32>
    %cst_36 = arith.constant dense<0.000000e+00> : vector<128xf32>
    %110 = vector.multi_reduction <add>, %109, %cst_36 [0] : vector<16x128xf32> to vector<128xf32>
    %111 = vector.shape_cast %110 : vector<128xf32> to vector<1x128xf32>
    %cst_37 = arith.constant 6.250000e-02 : f32
    %112 = vector.broadcast %cst_37 : f32 to vector<1x128xf32>
    %113 = arith.mulf %111, %112 : vector<1x128xf32>
    %114 = arith.mulf %109, %109 : vector<16x128xf32>
    %cst_38 = arith.constant dense<0.000000e+00> : vector<128xf32>
    %115 = vector.multi_reduction <add>, %114, %cst_38 [0] : vector<16x128xf32> to vector<128xf32>
    %116 = vector.shape_cast %115 : vector<128xf32> to vector<1x128xf32>
    %cst_39 = arith.constant 6.250000e-02 : f32
    %117 = vector.broadcast %cst_39 : f32 to vector<1x128xf32>
    %118 = arith.mulf %116, %117 : vector<1x128xf32>
    %119 = arith.mulf %113, %113 : vector<1x128xf32>
    %120 = arith.subf %118, %119 : vector<1x128xf32>
    %cst_40 = arith.constant 0.000000e+00 : f32
    %121 = vector.broadcast %cst_40 : f32 to vector<1x128xf32>
    %122 = arith.maximumf %120, %121 : vector<1x128xf32>
    %123 = vector.extract_strided_slice %0 {offsets = [6, 0], sizes = [1, 128], strides = [1, 1]} : vector<8x128xf32> to vector<1x128xf32>
    %124 = vector.shape_cast %123 : vector<1x128xf32> to vector<128xf32>
    %125 = vector.shape_cast %124 : vector<128xf32> to vector<1x128xf32>
    %cst_41 = arith.constant 9.99999974E-6 : f32
    %126 = vector.broadcast %cst_41 : f32 to vector<1x128xf32>
    %127 = arith.addf %122, %126 : vector<1x128xf32>
    %128 = math.rsqrt %127 : vector<1x128xf32>
    %129 = arith.mulf %125, %128 : vector<1x128xf32>
    %130 = vector.extract_strided_slice %0 {offsets = [7, 0], sizes = [1, 128], strides = [1, 1]} : vector<8x128xf32> to vector<1x128xf32>
    %131 = vector.shape_cast %130 : vector<1x128xf32> to vector<128xf32>
    %132 = vector.shape_cast %131 : vector<128xf32> to vector<1x128xf32>
    %133 = arith.mulf %113, %129 : vector<1x128xf32>
    %134 = arith.subf %132, %133 : vector<1x128xf32>
    %135 = vector.broadcast %129 : vector<1x128xf32> to vector<16x128xf32>
    %136 = arith.mulf %109, %135 : vector<16x128xf32>
    %137 = vector.broadcast %134 : vector<1x128xf32> to vector<16x128xf32>
    %138 = arith.addf %136, %137 : vector<16x128xf32>
    %cst_42 = arith.constant 0.000000e+00 : f32
    %139 = vector.broadcast %cst_42 : f32 to vector<16x128xf32>
    %140 = arith.maximumf %138, %139 : vector<16x128xf32>
    %141 = arith.truncf %140 : vector<16x128xf32> to vector<16x128xbf16>
    %c0_43 = arith.constant 0 : index
    %c0_44 = arith.constant 0 : index
    %142 = vector.load %arg3[%c0_43, %c0_44] : memref<128x128xbf16, #tpu.memory_space<vmem>>, vector<128x128xbf16>
    %cst_45 = arith.constant dense<0.000000e+00> : vector<16x128xf32>
    %143 = tpu.matmul %141, %142, %cst_45 {dimension_numbers = #tpu.dot_dimension_numbers<[1], [0], [0], [1], [0, 0, 1, 1], [], []>} : vector<16x128xbf16>, vector<128x128xbf16>, vector<16x128xf32> -> vector<16x128xf32>
    %c0_46 = arith.constant 0 : index
    %c0_47 = arith.constant 0 : index
    %144 = vector.load %arg5[%c0_46, %c0_47] : memref<1x128xf32, #tpu.memory_space<vmem>>, vector<1x128xf32>
    %145 = vector.broadcast %144 : vector<1x128xf32> to vector<16x128xf32>
    %146 = arith.addf %143, %145 : vector<16x128xf32>
    %c0_48 = arith.constant 0 : index
    %c0_49 = arith.constant 0 : index
    %147 = vector.load %arg6[%c0_48, %c0_49] : memref<16x128xf32, #tpu.memory_space<vmem>>, vector<16x128xf32>
    tpu.vector_store %arg6[%c0_48, %c0_49], %146 {strides = array<i32>} : memref<16x128xf32, #tpu.memory_space<vmem>>, vector<16x128xf32>,
    return
  }
}

</mosaic_0001>

<bundles_post_ra>
// kernel: mlp_forward.1
= control target key start
LH: loop header
LB: loop body
LE: loop exit
PB: predicated region body
PF: predicated region fallthrough
CT: control target
= control target key end

     0   :  { %11 = vsyncpa [#allocation3], 0  ;;  %s1217_s0 = inlined_call_operand.vmem [shape: f32[16,128], index: 0, kind: input, shape index: {}]   ;;  %s1218_s1 = inlined_call_operand.vmem [shape: bf16[128,128], index: 1, kind: input, shape index: {}]   ;;  %s1219_s2 = inlined_call_operand.hbm [shape: bf16[3,128,128], index: 2, kind: input, shape index: {}]   ;;  %s1220_s3 = inlined_call_operand.hbm [shape: bf16[128,128], index: 3, kind: input, shape index: {}]   ;;  %s1221_s4 = inlined_call_operand.vmem [shape: f32[8,128], index: 4, kind: input, shape index: {}]   ;;  %s1222_s5 = inlined_call_operand.vmem [shape: f32[1,128], index: 5, kind: input, shape index: {}]   ;;  %s1223_s6 = inlined_call_operand.vmem [shape: f32[16,128], index: 6, kind: output, shape index: {}]  }
   0x1   :  { %12 = vsyncpa [#allocation5], 0  ;;  %s1058_s21 = smov [#allocation2]  }
   0x2   :  { %s22_s22 = sshll.u32 %s1058_s21, 4  ;;  %s23_s22 = int_to_ptr.vmem [resolvable:$true] %s22_s22 }
   0x3   :  { %s1022_s23 = scalar_lea.vmem %s23_s22, 3072  ;;  %p1027_p1 = scmp.lt.s32.totalorder %s23_s22, %s23_s22 }
   0x4   :  { %p1023_p0 = scmp.ne.s32.totalorder %s23_s22, %s1022_s23  ;;  %p1028_p2 = scmp.lt.s32.totalorder %s1022_s23, %s1022_s23 }
   0x6   :  { %p1029_p3 = por %p1028_p2, %p1027_p1 }
   0x8   :  { %p1030_p4 = pnand %p1029_p3, %p1023_p0 }
   0xa   :  { %1033 = shalt.err (!%p1030_p4)
}
   0xb   :  { %s1059_s24 = smov 64   ;;  %s1060_s25 = smov 4  }
   0xc   :  { %28 = dma.hbm_to_vmem [thread:$0]  %s1219_s2, 3072, %s23_s22, [#allocation3], %s1059_s24, %s1059_s24, %s1060_s25  }
   0xd   :  { %s1061_s28 = smov [#allocation4]  }
   0xe   :  { %s34_s29 = sshll.u32 %s1061_s28, 4  ;;  %s35_s29 = int_to_ptr.vmem [resolvable:$true] %s34_s29 }
   0xf   :  { %s1042_s30 = scalar_lea.vmem %s35_s29, 1024  ;;  %p1047_p6 = scmp.lt.s32.totalorder %s35_s29, %s35_s29 }
  0x10   :  { %p1043_p5 = scmp.ne.s32.totalorder %s35_s29, %s1042_s30  ;;  %p1048_p7 = scmp.lt.s32.totalorder %s1042_s30, %s1042_s30 }
  0x12   :  { %p1049_p8 = por %p1048_p7, %p1047_p6 }
  0x14   :  { %p1050_p9 = pnand %p1049_p8, %p1043_p5 }
  0x16   :  { %1053 = shalt.err (!%p1050_p9)
}
  0x17   :  { %40 = dma.hbm_to_vmem [thread:$0]  %s1220_s3, 1024, %s35_s29, [#allocation5], %s1059_s24, %s1059_s24, %s1060_s25  }
  0x18   :  { %1054 = dma.done.wait [#allocation3], 3072  }
  0x19   :  { %1055 = vsyncadd [#allocation3], 4294964224 }
  0x1a   :  { %1056 = dma.done.wait [#allocation5], 1024  }
  0x1b   :  { %1057 = vsyncadd [#allocation5], 4294966272  ;;  %v1062_v0 = vmov 0.0   ;;  %vm1063_vm0 = vmmov 0   ;;  %v966_v1 = vld [vmem:[%s1218_s1 + $0x38] sm:$0xff]   ;;  %v967_v2 = vld [vmem:[%s1218_s1 + $0x30] sm:$0xff]   ;;  %v190_v46 = vlaneseq }
  0x1c   :  { %860 = vmatprep.subr.bf16.mxu0 %v1062_v0  ;;  %876 = vmatprep.mubr.msk.bf16.mxu0 %vm1063_vm0, %v1062_v0  ;;  %v968_v3 = vld [vmem:[%s1218_s1 + $0x28] sm:$0xff]   ;;  %v969_v4 = vld [vmem:[%s1218_s1 + $0x20] sm:$0xff]   ;;  %v970_v5 = vld [vmem:[%s1218_s1 + $0x18] sm:$0xff]  }
  0x1d   :  { %880 = vmatprep.subr.bf16.mxu1 %v1062_v0  ;;  %896 = vmatprep.mubr.msk.bf16.mxu1 %vm1063_vm0, %v1062_v0  ;;  %v971_v6 = vld [vmem:[%s1218_s1 + $0x10] sm:$0xff]   ;;  %v972_v7 = vld [vmem:[%s1218_s1 + $0x8] sm:$0xff]   ;;  %v973_v8 = vld [vmem:[%s1218_s1] sm:$0xff]   ;;  %v1159_v47 = vshrl.u32 %v190_v46, 7 }
  0x1e   :  { %861 = vmatpush3.bf16.msra.mxu0 %v966_v1  ;;  %v53_v9 = vld [vmem:[%s1217_s0] sm:$0xff]  ;;  %v54_v10 = vld [vmem:[%s1217_s0 + $0x8] sm:$0xff]  ;;  %v974_v12 = vld [vmem:[#allocation2 + $0x38] sm:$0xff]  }
  0x1f   :  { %862 = vmatprep.subr.bf16.mxu0 %v1062_v0  ;;  %v55_v11 = vpack.c.bf16 %v54_v10, %v53_v9  ;;  %881 = vmatpush3.bf16.msra.mxu1 %v974_v12  ;;  %v975_v13 = vld [vmem:[#allocation2 + $0x30] sm:$0xff]   ;;  %v976_v14 = vld [vmem:[#allocation2 + $0x28] sm:$0xff]   ;;  %v977_v15 = vld [vmem:[#allocation2 + $0x20] sm:$0xff]   ;;  %v192_v51 = vsub.s32 0, %v1159_v47  ;;  %v198_v55 = vsub.s32 1, %v1159_v47 }
  0x20   :  { %882 = vmatprep.subr.bf16.mxu1 %v1062_v0  ;;  %v978_v16 = vld [vmem:[#allocation2 + $0x18] sm:$0xff]   ;;  %v979_v17 = vld [vmem:[#allocation2 + $0x10] sm:$0xff]   ;;  %v980_v18 = vld [vmem:[#allocation2 + $0x8] sm:$0xff]  }
  0x21   :  { %v981_v19 = vld [vmem:[#allocation2] sm:$0xff]  }
  0x22   :  { %863 = vmatpush3.bf16.msra.mxu0 %v967_v2  ;;  %v1164_v48 = vld [vmem:[%s1221_s4] sm:$0xff]  ;;  %v982_v2 = vld [vmem:[#allocation2 + $0x78] sm:$0xff]  }
  0x23   :  { %864 = vmatprep.subr.bf16.mxu0 %v1062_v0  ;;  %883 = vmatpush3.bf16.msra.mxu1 %v975_v13  ;;  %v989_v9 = vld [vmem:[#allocation2 + $0x40] sm:$0xff]  }
  0x24   :  { %884 = vmatprep.subr.bf16.mxu1 %v1062_v0 }
  0x26   :  { %865 = vmatpush3.bf16.msra.mxu0 %v968_v3  ;;  %v983_v3 = vld [vmem:[#allocation2 + $0x70] sm:$0xff]  }
  0x27   :  { %866 = vmatprep.subr.bf16.mxu0 %v1062_v0  ;;  %885 = vmatpush3.bf16.msra.mxu1 %v976_v14 }
  0x28   :  { %886 = vmatprep.subr.bf16.mxu1 %v1062_v0 }
  0x2a   :  { %867 = vmatpush3.bf16.msra.mxu0 %v969_v4  ;;  %v984_v4 = vld [vmem:[#allocation2 + $0x68] sm:$0xff]  }
  0x2b   :  { %868 = vmatprep.subr.bf16.mxu0 %v1062_v0  ;;  %887 = vmatpush3.bf16.msra.mxu1 %v977_v15 }
  0x2c   :  { %888 = vmatprep.subr.bf16.mxu1 %v1062_v0 }
  0x2e   :  { %869 = vmatpush3.bf16.msra.mxu0 %v970_v5  ;;  %v985_v5 = vld [vmem:[#allocation2 + $0x60] sm:$0xff]  }
  0x2f   :  { %870 = vmatprep.subr.bf16.mxu0 %v1062_v0  ;;  %889 = vmatpush3.bf16.msra.mxu1 %v978_v16 }
  0x30   :  { %890 = vmatprep.subr.bf16.mxu1 %v1062_v0 }
  0x32   :  { %871 = vmatpush3.bf16.msra.mxu0 %v971_v6  ;;  %v986_v6 = vld [vmem:[#allocation2 + $0x58] sm:$0xff]  }
  0x33   :  { %872 = vmatprep.subr.bf16.mxu0 %v1062_v0  ;;  %891 = vmatpush3.bf16.msra.mxu1 %v979_v17 }
  0x34   :  { %892 = vmatprep.subr.bf16.mxu1 %v1062_v0 }
  0x36   :  { %873 = vmatpush3.bf16.msra.mxu0 %v972_v7  ;;  %v987_v7 = vld [vmem:[#allocation2 + $0x50] sm:$0xff]  }
  0x37   :  { %874 = vmatprep.subr.bf16.mxu0 %v1062_v0  ;;  %893 = vmatpush3.bf16.msra.mxu1 %v980_v18 }
  0x38   :  { %894 = vmatprep.subr.bf16.mxu1 %v1062_v0 }
  0x3a   :  { %875 = vmatpush3.bf16.msra.mxu0 %v973_v8  ;;  %v988_v8 = vld [vmem:[#allocation2 + $0x48] sm:$0xff]  }
  0x3b   :  { %900 = vmatprep.subr.bf16.mxu0 %v1062_v0  ;;  %895 = vmatpush3.bf16.msra.mxu1 %v981_v19 }
  0x3c   :  { %920 = vmatprep.subr.bf16.mxu1 %v1062_v0 }
  0x3d   :  { %877 = vmatmul.mubr.bf16.vlgmr.msra.gmra.mxu0 %v55_v11 }
  0x3e   :  { %916 = vmatprep.mubr.msk.bf16.mxu0 %vm1063_vm0, %v1062_v0  ;;  %901 = vmatpush3.bf16.msra.mxu0 %v982_v2 }
  0x3f   :  { %902 = vmatprep.subr.bf16.mxu0 %v1062_v0 }
  0x42   :  { %903 = vmatpush3.bf16.msra.mxu0 %v983_v3 }
  0x43   :  { %904 = vmatprep.subr.bf16.mxu0 %v1062_v0 }
  0x46   :  { %905 = vmatpush3.bf16.msra.mxu0 %v984_v4 }
  0x47   :  { %906 = vmatprep.subr.bf16.mxu0 %v1062_v0 }
  0x4a   :  { %907 = vmatpush3.bf16.msra.mxu0 %v985_v5 }
  0x4b   :  { %908 = vmatprep.subr.bf16.mxu0 %v1062_v0 }
  0x4e   :  { %909 = vmatpush3.bf16.msra.mxu0 %v986_v6 }
  0x4f   :  { %910 = vmatprep.subr.bf16.mxu0 %v1062_v0 }
  0x52   :  { %911 = vmatpush3.bf16.msra.mxu0 %v987_v7 }
  0x53   :  { %912 = vmatprep.subr.bf16.mxu0 %v1062_v0 }
  0x56   :  { %913 = vmatpush3.bf16.msra.mxu0 %v988_v8 }
  0x57   :  { %914 = vmatprep.subr.bf16.mxu0 %v1062_v0 }
  0x5a   :  { %915 = vmatpush3.bf16.msra.mxu0 %v989_v9 }
  0x5b   :  { %940 = vmatprep.subr.bf16.mxu0 %v1062_v0 }
  0xfd   :  { %v154_v20 = vpop.f32.mrf.mxu0 }
  0xfe   :  { %v169_v23 = vmul.f32 %v154_v20, %v154_v20 }
  0xff   :  { %v878_v21 = vpop.f32.mrf.mxu0 }
 0x101   :  { %v157_v22 = vpop.f32.mrf.mxu0 }
 0x102   :  { %v161_v24 = vadd.f32 %v157_v22, %v154_v20  ;;  %v170_v25 = vmul.f32 %v157_v22, %v157_v22 }
 0x103   :  { %v879_v26 = vpop.f32.mrf.mxu0 }
 0x104   :  { %v162_v27 = vrot.slane %v161_v24, 4  ;;  %v171_v28 = vadd.f32 %v170_v25, %v169_v23 }
 0x106   :  { %v163_v29 = vadd.f32 %v162_v27, %v161_v24  ;;  %v172_v30 = vrot.slane %v171_v28, 4 }
 0x108   :  { %v164_v31 = vrot.slane %v163_v29, 2  ;;  %v173_v32 = vadd.f32 %v172_v30, %v171_v28 }
 0x10a   :  { %v165_v33 = vadd.f32 %v164_v31, %v163_v29  ;;  %v174_v34 = vrot.slane %v173_v32, 2 }
 0x10c   :  { %v166_v35 = vrot.slane %v165_v33, 1  ;;  %v175_v36 = vadd.f32 %v174_v34, %v173_v32 }
 0x10e   :  { %v167_v37 = vadd.f32 %v166_v35, %v165_v33  ;;  %v176_v38 = vrot.slane %v175_v36, 1 }
 0x110   :  { %v168_v39 = vmul.f32 0.0625, %v167_v37  ;;  %v177_v40 = vadd.f32 %v176_v38, %v175_v36  ;;  %v341_v38 = vsub.s32 2, %v1159_v47 }
 0x112   :  { %v178_v41 = vmul.f32 0.0625, %v177_v40  ;;  %v179_v42 = vmul.f32 %v168_v39, %v168_v39 }
 0x114   :  { %v180_v43 = vsub.f32 %v178_v41, %v179_v42  ;;  %v347_v42 = vsub.s32 3, %v1159_v47 }
 0x116   :  { %v181_v44 = vmax.f32 %v180_v43, 0.0 }
 0x118   :  { %v182_v45 = vadd.f32 1e-05, %v181_v44 }
 0x11a   :  { %1006 = vrsqrt.f32 %v182_v45 }
 0x127   :  { %v1007_v49 = vpop.eup %1006 }
 0x128   :  { %v184_v50 = vmul.f32 %v1007_v49, %v1164_v48 }
 0x12a   :  { %v185_v52 = vmul.f32 %v184_v50, %v168_v39  ;;  %v193_v54 = vrot.slane %v184_v50, %v192_v51 }
 0x12c   :  { %v187_v53 = vrot.slane %v185_v52, 7  ;;  %v194_v57 = vmul.f32 %v193_v54, %v154_v20  ;;  %v195_v58 = vmul.f32 %v193_v54, %v157_v22  ;;  %v990_v54 = vld [vmem:[#allocation2 + $0xb8] sm:$0xff]  }
 0x12e   :  { %v189_v56 = vsub.f32 %v1164_v48, %v187_v53 }
 0x130   :  { %v199_v59 = vrot.slane %v189_v56, %v198_v55  ;;  %v991_v55 = vld [vmem:[#allocation2 + $0xb0] sm:$0xff]   ;;  %v992_v56 = vld [vmem:[#allocation2 + $0xa8] sm:$0xff]  }
 0x132   :  { %v201_v60 = vadd.f32 %v199_v59, %v195_v58  ;;  %v200_v61 = vadd.f32 %v199_v59, %v194_v57  ;;  %v993_v57 = vld [vmem:[#allocation2 + $0xa0] sm:$0xff]   ;;  %v994_v58 = vld [vmem:[#allocation2 + $0x98] sm:$0xff]   ;;  %v995_v59 = vld [vmem:[#allocation2 + $0x90] sm:$0xff]  }
 0x134   :  { %v202_v62 = vmax.f32 %v200_v61, 0.0  ;;  %v203_v63 = vmax.f32 %v201_v60, 0.0  ;;  %v996_v60 = vld [vmem:[#allocation2 + $0x88] sm:$0xff]   ;;  %v997_v61 = vld [vmem:[#allocation2 + $0x80] sm:$0xff]  }
 0x136   :  { %v204_v1 = vpack.c.bf16 %v203_v63, %v202_v62 }
 0x138   :  { %897 = vmatmul.mubr.bf16.vlgmr.msra.gmra.mxu1 %v204_v1 }
 0x139   :  { %936 = vmatprep.mubr.msk.bf16.mxu1 %vm1063_vm0, %v1062_v0  ;;  %921 = vmatpush3.bf16.msra.mxu1 %v990_v54 }
 0x13a   :  { %922 = vmatprep.subr.bf16.mxu1 %v1062_v0 }
 0x13d   :  { %923 = vmatpush3.bf16.msra.mxu1 %v991_v55 }
 0x13e   :  { %924 = vmatprep.subr.bf16.mxu1 %v1062_v0 }
 0x141   :  { %925 = vmatpush3.bf16.msra.mxu1 %v992_v56 }
 0x142   :  { %926 = vmatprep.subr.bf16.mxu1 %v1062_v0 }
 0x145   :  { %927 = vmatpush3.bf16.msra.mxu1 %v993_v57 }
 0x146   :  { %928 = vmatprep.subr.bf16.mxu1 %v1062_v0 }
 0x149   :  { %929 = vmatpush3.bf16.msra.mxu1 %v994_v58 }
 0x14a   :  { %930 = vmatprep.subr.bf16.mxu1 %v1062_v0 }
 0x14d   :  { %931 = vmatpush3.bf16.msra.mxu1 %v995_v59 }
 0x14e   :  { %932 = vmatprep.subr.bf16.mxu1 %v1062_v0 }
 0x151   :  { %933 = vmatpush3.bf16.msra.mxu1 %v996_v60 }
 0x152   :  { %934 = vmatprep.subr.bf16.mxu1 %v1062_v0 }
 0x155   :  { %935 = vmatpush3.bf16.msra.mxu1 %v997_v61 }
 0x1f8   :  { %v303_v10 = vpop.f32.mrf.mxu1 }
 0x1f9   :  { %v318_v13 = vmul.f32 %v303_v10, %v303_v10 }
 0x1fa   :  { %v898_v11 = vpop.f32.mrf.mxu1 }
 0x1fc   :  { %v306_v12 = vpop.f32.mrf.mxu1 }
 0x1fd   :  { %v310_v14 = vadd.f32 %v306_v12, %v303_v10  ;;  %v319_v15 = vmul.f32 %v306_v12, %v306_v12 }
 0x1fe   :  { %v899_v16 = vpop.f32.mrf.mxu1 }
 0x1ff   :  { %v311_v17 = vrot.slane %v310_v14, 4  ;;  %v320_v18 = vadd.f32 %v319_v15, %v318_v13 }
 0x201   :  { %v312_v19 = vadd.f32 %v311_v17, %v310_v14  ;;  %v321_v20 = vrot.slane %v320_v18, 4 }
 0x203   :  { %v313_v21 = vrot.slane %v312_v19, 2  ;;  %v322_v22 = vadd.f32 %v321_v20, %v320_v18 }
 0x205   :  { %v314_v23 = vadd.f32 %v313_v21, %v312_v19  ;;  %v323_v24 = vrot.slane %v322_v22, 2 }
 0x207   :  { %v315_v25 = vrot.slane %v314_v23, 1  ;;  %v324_v26 = vadd.f32 %v323_v24, %v322_v22 }
 0x209   :  { %v316_v27 = vadd.f32 %v315_v25, %v314_v23  ;;  %v325_v28 = vrot.slane %v324_v26, 1 }
 0x20b   :  { %v317_v29 = vmul.f32 0.0625, %v316_v27  ;;  %v326_v30 = vadd.f32 %v325_v28, %v324_v26  ;;  %v491_v27 = vsub.s32 4, %v1159_v47 }
 0x20d   :  { %v327_v31 = vmul.f32 0.0625, %v326_v30  ;;  %v328_v32 = vmul.f32 %v317_v29, %v317_v29 }
 0x20f   :  { %v329_v33 = vsub.f32 %v327_v31, %v328_v32  ;;  %v497_v31 = vsub.s32 5, %v1159_v47 }
 0x211   :  { %v330_v34 = vmax.f32 %v329_v33, 0.0 }
 0x213   :  { %v331_v35 = vadd.f32 1e-05, %v330_v34 }
 0x215   :  { %1008 = vrsqrt.f32 %v331_v35 }
 0x222   :  { %v1009_v36 = vpop.eup %1008 }
 0x223   :  { %v333_v37 = vmul.f32 %v1009_v36, %v1164_v48 }
 0x225   :  { %v334_v39 = vmul.f32 %v333_v37, %v317_v29  ;;  %v342_v41 = vrot.slane %v333_v37, %v341_v38 }
 0x227   :  { %v336_v40 = vrot.slane %v334_v39, 7  ;;  %v343_v44 = vmul.f32 %v342_v41, %v303_v10  ;;  %v344_v45 = vmul.f32 %v342_v41, %v306_v12  ;;  %v998_v41 = vld [vmem:[#allocation4 + $0x38] sm:$0xff]  }
 0x229   :  { %v338_v43 = vsub.f32 %v1164_v48, %v336_v40 }
 0x22b   :  { %v348_v46 = vrot.slane %v338_v43, %v347_v42  ;;  %v999_v42 = vld [vmem:[#allocation4 + $0x30] sm:$0xff]   ;;  %v1000_v43 = vld [vmem:[#allocation4 + $0x28] sm:$0xff]  }
 0x22d   :  { %v349_v49 = vadd.f32 %v348_v46, %v343_v44  ;;  %v350_v50 = vadd.f32 %v348_v46, %v344_v45  ;;  %v1001_v44 = vld [vmem:[#allocation4 + $0x20] sm:$0xff]   ;;  %v1002_v45 = vld [vmem:[#allocation4 + $0x18] sm:$0xff]   ;;  %v1003_v46 = vld [vmem:[#allocation4 + $0x10] sm:$0xff]  }
 0x22f   :  { %v352_v51 = vmax.f32 %v350_v50, 0.0  ;;  %v351_v52 = vmax.f32 %v349_v49, 0.0  ;;  %v1004_v49 = vld [vmem:[#allocation4 + $0x8] sm:$0xff]   ;;  %v1005_v50 = vld [vmem:[#allocation4] sm:$0xff]  }
 0x231   :  { %v353_v53 = vpack.c.bf16 %v352_v51, %v351_v52 }
 0x233   :  { %917 = vmatmul.mubr.bf16.vlgmr.msra.gmra.mxu0 %v353_v53 }
 0x234   :  { %956 = vmatprep.mubr.msk.bf16.mxu0 %vm1063_vm0, %v1062_v0  ;;  %941 = vmatpush3.bf16.msra.mxu0 %v998_v41 }
 0x235   :  { %942 = vmatprep.subr.bf16.mxu0 %v1062_v0 }
 0x238   :  { %943 = vmatpush3.bf16.msra.mxu0 %v999_v42 }
 0x239   :  { %944 = vmatprep.subr.bf16.mxu0 %v1062_v0 }
 0x23c   :  { %945 = vmatpush3.bf16.msra.mxu0 %v1000_v43 }
 0x23d   :  { %946 = vmatprep.subr.bf16.mxu0 %v1062_v0 }
 0x240   :  { %947 = vmatpush3.bf16.msra.mxu0 %v1001_v44 }
 0x241   :  { %948 = vmatprep.subr.bf16.mxu0 %v1062_v0 }
 0x244   :  { %949 = vmatpush3.bf16.msra.mxu0 %v1002_v45 }
 0x245   :  { %950 = vmatprep.subr.bf16.mxu0 %v1062_v0 }
 0x248   :  { %951 = vmatpush3.bf16.msra.mxu0 %v1003_v46 }
 0x249   :  { %952 = vmatprep.subr.bf16.mxu0 %v1062_v0 }
 0x24c   :  { %953 = vmatpush3.bf16.msra.mxu0 %v1004_v49 }
 0x24d   :  { %954 = vmatprep.subr.bf16.mxu0 %v1062_v0 }
 0x250   :  { %955 = vmatpush3.bf16.msra.mxu0 %v1005_v50 }
 0x2f3   :  { %v453_v62 = vpop.f32.mrf.mxu0 }
 0x2f4   :  { %v468_v2 = vmul.f32 %v453_v62, %v453_v62 }
 0x2f5   :  { %v918_v63 = vpop.f32.mrf.mxu0 }
 0x2f7   :  { %v456_v1 = vpop.f32.mrf.mxu0 }
 0x2f8   :  { %v460_v3 = vadd.f32 %v456_v1, %v453_v62  ;;  %v469_v4 = vmul.f32 %v456_v1, %v456_v1 }
 0x2f9   :  { %v919_v5 = vpop.f32.mrf.mxu0 }
 0x2fa   :  { %v461_v6 = vrot.slane %v460_v3, 4  ;;  %v470_v7 = vadd.f32 %v469_v4, %v468_v2 }
 0x2fc   :  { %v462_v8 = vadd.f32 %v461_v6, %v460_v3  ;;  %v471_v9 = vrot.slane %v470_v7, 4 }
 0x2fe   :  { %v463_v10 = vrot.slane %v462_v8, 2  ;;  %v472_v11 = vadd.f32 %v471_v9, %v470_v7 }
 0x300   :  { %v464_v12 = vadd.f32 %v463_v10, %v462_v8  ;;  %v473_v13 = vrot.slane %v472_v11, 2 }
 0x302   :  { %v465_v14 = vrot.slane %v464_v12, 1  ;;  %v474_v15 = vadd.f32 %v473_v13, %v472_v11 }
 0x304   :  { %v466_v16 = vadd.f32 %v465_v14, %v464_v12  ;;  %v475_v17 = vrot.slane %v474_v15, 1 }
 0x306   :  { %v467_v18 = vmul.f32 0.0625, %v466_v16  ;;  %v476_v19 = vadd.f32 %v475_v17, %v474_v15  ;;  %v641_v15 = vsub.s32 6, %v1159_v47 }
 0x308   :  { %v477_v20 = vmul.f32 0.0625, %v476_v19  ;;  %v478_v21 = vmul.f32 %v467_v18, %v467_v18  ;;  %v647_v19 = vsub.s32 7, %v1159_v47 }
 0x30a   :  { %v479_v22 = vsub.f32 %v477_v20, %v478_v21 }
 0x30c   :  { %v480_v23 = vmax.f32 %v479_v22, 0.0 }
 0x30e   :  { %v481_v24 = vadd.f32 1e-05, %v480_v23 }
 0x310   :  { %1010 = vrsqrt.f32 %v481_v24 }
 0x31d   :  { %v1011_v25 = vpop.eup %1010 }
 0x31e   :  { %v483_v26 = vmul.f32 %v1011_v25, %v1164_v48 }
 0x320   :  { %v484_v28 = vmul.f32 %v483_v26, %v467_v18  ;;  %v492_v30 = vrot.slane %v483_v26, %v491_v27 }
 0x322   :  { %v486_v29 = vrot.slane %v484_v28, 7  ;;  %v493_v33 = vmul.f32 %v492_v30, %v453_v62  ;;  %v494_v34 = vmul.f32 %v492_v30, %v456_v1 }
 0x324   :  { %v488_v32 = vsub.f32 %v1164_v48, %v486_v29  ;;  %v806_v29 = vld [vmem:[%s1222_s5] ss:$0 sm:$0xff] }
 0x326   :  { %v498_v35 = vrot.slane %v488_v32, %v497_v31 }
 0x328   :  { %v499_v36 = vadd.f32 %v498_v35, %v493_v33  ;;  %v500_v37 = vadd.f32 %v498_v35, %v494_v34 }
 0x32a   :  { %v502_v38 = vmax.f32 %v500_v37, 0.0  ;;  %v501_v39 = vmax.f32 %v499_v36, 0.0 }
 0x32c   :  { %v503_v40 = vpack.c.bf16 %v502_v38, %v501_v39 }
 0x32e   :  { %937 = vmatmul.mubr.bf16.vlgmr.msra.gmra.mxu1 %v503_v40 }
 0x3ee   :  { %v603_v51 = vpop.f32.mrf.mxu1 }
 0x3ef   :  { %v618_v54 = vmul.f32 %v603_v51, %v603_v51 }
 0x3f0   :  { %v938_v52 = vpop.f32.mrf.mxu1 }
 0x3f2   :  { %v606_v53 = vpop.f32.mrf.mxu1 }
 0x3f3   :  { %v610_v55 = vadd.f32 %v606_v53, %v603_v51  ;;  %v619_v56 = vmul.f32 %v606_v53, %v606_v53 }
 0x3f4   :  { %v939_v57 = vpop.f32.mrf.mxu1 }
 0x3f5   :  { %v611_v58 = vrot.slane %v610_v55, 4  ;;  %v620_v59 = vadd.f32 %v619_v56, %v618_v54 }
 0x3f7   :  { %v612_v60 = vadd.f32 %v611_v58, %v610_v55  ;;  %v621_v61 = vrot.slane %v620_v59, 4 }
 0x3f9   :  { %v613_v62 = vrot.slane %v612_v60, 2  ;;  %v622_v63 = vadd.f32 %v621_v61, %v620_v59 }
 0x3fb   :  { %v614_v1 = vadd.f32 %v613_v62, %v612_v60  ;;  %v623_v2 = vrot.slane %v622_v63, 2 }
 0x3fd   :  { %v615_v3 = vrot.slane %v614_v1, 1  ;;  %v624_v4 = vadd.f32 %v623_v2, %v622_v63 }
 0x3ff   :  { %v616_v0 = vadd.f32 %v615_v3, %v614_v1  ;;  %v625_v5 = vrot.slane %v624_v4, 1 }
 0x401   :  { %v617_v6 = vmul.f32 0.0625, %v616_v0  ;;  %v626_v7 = vadd.f32 %v625_v5, %v624_v4 }
 0x403   :  { %v627_v8 = vmul.f32 0.0625, %v626_v7  ;;  %v628_v9 = vmul.f32 %v617_v6, %v617_v6 }
 0x405   :  { %v629_v10 = vsub.f32 %v627_v8, %v628_v9 }
 0x407   :  { %v630_v11 = vmax.f32 %v629_v10, 0.0 }
 0x409   :  { %v631_v12 = vadd.f32 1e-05, %v630_v11 }
 0x40b   :  { %1012 = vrsqrt.f32 %v631_v12 }
 0x418   :  { %v1013_v13 = vpop.eup %1012 }
 0x419   :  { %v633_v14 = vmul.f32 %v1013_v13, %v1164_v48 }
 0x41b   :  { %v634_v16 = vmul.f32 %v633_v14, %v617_v6  ;;  %v642_v18 = vrot.slane %v633_v14, %v641_v15 }
 0x41d   :  { %v636_v17 = vrot.slane %v634_v16, 7  ;;  %v643_v21 = vmul.f32 %v642_v18, %v603_v51  ;;  %v644_v22 = vmul.f32 %v642_v18, %v606_v53 }
 0x41f   :  { %v638_v20 = vsub.f32 %v1164_v48, %v636_v17 }
 0x421   :  { %v648_v23 = vrot.slane %v638_v20, %v647_v19 }
 0x423   :  { %v649_v24 = vadd.f32 %v648_v23, %v643_v21  ;;  %v650_v25 = vadd.f32 %v648_v23, %v644_v22 }
 0x425   :  { %v652_v26 = vmax.f32 %v650_v25, 0.0  ;;  %v651_v27 = vmax.f32 %v649_v24, 0.0 }
 0x427   :  { %v653_v28 = vpack.c.bf16 %v652_v26, %v651_v27 }
 0x429   :  { %957 = vmatmul.mubr.bf16.vlgmr.msra.gmra.mxu0 %v653_v28 }
 0x4e9   :  { %v759_v30 = vpop.f32.mrf.mxu0 }
 0x4ea   :  { %v760_v31 = vadd.f32 %v806_v29, %v759_v30 }
 0x4eb   :  { %v958_v32 = vpop.f32.mrf.mxu0 }
 0x4ec   :  { %766 = vst [vmem:[%s1223_s6] sm:$0xff] %v760_v31 }
 0x4ed   :  { %v762_v47 = vpop.f32.mrf.mxu0 }
 0x4ee   :  { %v763_v48 = vadd.f32 %v806_v29, %v762_v47 }
 0x4ef   :  { %v959_v33 = vpop.f32.mrf.mxu0 }
 0x4f0   :  { %767 = vst [vmem:[%s1223_s6 + $0x8] sm:$0xff] %v763_v48 }
 0x4f1   :  { %772 = vsyncpa [#allocation3], 1 }
 0x4f2   :  { %773 = vsyncpa [#allocation5], 1 }

</bundles_post_ra>
